<compile_context>
chip_gen: v7x
topology: tpu7x:2x2x1
jax: 0.10.0
libtpu: 0.0.40
codegen_flags: <defaults>
</compile_context>

<pallas_src>
import functools

import jax
import jax.numpy as jnp
from jax.experimental import pallas as pl
from jax.experimental.pallas import tpu as pltpu


def _round_up(x, m):
    return ((x + m - 1) // m) * m


def _tpu_caps():
    """(per-core VMEM capacity bytes, tensorcores per chip) — defensive query."""
    vmem_cap = 64 << 20        # conservative default (v7x per-core VMEM)
    n_cores = 1
    try:
        info = pltpu.get_tpu_info()
        cap = getattr(info, "vmem_capacity_bytes", None)
        if cap:
            vmem_cap = int(cap)
        for name in ("num_tensorcores", "tensorcore_count", "num_cores", "core_count"):
            v = getattr(info, name, None)
            if isinstance(v, int) and v > 0:
                n_cores = v
                break
    except Exception:
        pass
    try:
        kind = jax.devices()[0].device_kind.lower()
        if "7" in kind:        # v7x family: 2 TensorCores per chip
            n_cores = max(n_cores, 2)
    except Exception:
        pass
    return vmem_cap, n_cores


def _biaffine_kernel(n_rep, x1_ref, x2_ref, wb_ref, red_ref, wl1_ref, wl2_ref,
                     b_ref, o_ref):
    f32 = jnp.float32
    x1 = x1_ref[...]                                      # (tm, D)  input dtype
    x2 = x2_ref[...]                                      # (tm, D)

    # Bilinear term: one lane-dense MXU matmul, a VPU replicate+multiply, one small reduce.
    t = jnp.dot(x1, wb_ref[...], preferred_element_type=f32)              # (tm, O*D)
    x2f = x2.astype(f32)
    x2r = x2f if n_rep == 1 else jnp.concatenate([x2f] * n_rep, axis=1)   # (tm, O*D)
    bil = jnp.dot(t * x2r, red_ref[...], preferred_element_type=f32)      # (tm, O_pad)

    # Linear term on concat(x1, x2) without concatenating: weight halves split in wrapper.
    lin = (jnp.dot(x1, wl1_ref[...], preferred_element_type=f32)
           + jnp.dot(x2, wl2_ref[...], preferred_element_type=f32)
           + b_ref[...])                                                   # (tm, O_pad)

    o_ref[...] = (bil + lin).astype(o_ref.dtype)


def biaffine_attention(x1, x2, w_bilinear, w_linear, b_linear, *, tm=None):
    """x1, x2: (N, D); w_bilinear: (O, D, D); w_linear: (O, 2D); b_linear: (O,)."""
    N, D = x1.shape
    O = w_bilinear.shape[0]
    dt = x1.dtype
    itemsize = jnp.dtype(dt).itemsize

    OD = O * D
    O_pad = max(128, _round_up(O, 128))        # lane-dense output width

    vmem_cap, n_cores = _tpu_caps()
    headroom = 8 << 20                         # compiler internal scratch headroom

    # Resident weights (single-buffered via pl.Buffered(1)).
    weight_bytes = (D * OD * itemsize          # wb_big
                    + OD * O_pad * 4           # red (f32)
                    + 2 * D * O_pad * itemsize # wl1, wl2
                    + 8 * O_pad * 4)           # bias tile (padded to (8,128))
    # Per-row bytes: double-buffered x1/x2/out tiles + f32 temporaries (t, x2r, prod, lin).
    per_row = (2 * 2 * D * itemsize            # x1, x2 tiles, double-buffered
               + 2 * O_pad * itemsize          # out tile, double-buffered
               + 4 * OD * 4                    # f32 temporaries in the O*D lane space
               + 2 * O_pad * 4)                # bil / lin accumulators

    usable = max(vmem_cap - headroom - weight_bytes, 1 << 20)
    tm_budget = max(8, min(2048, (usable // per_row) // 8 * 8))

    # Only split the grid for multiple TensorCores (v7x); 1-TC chips get one big tile.
    rows_per_core = _round_up(max(1, -(-N // max(n_cores, 1))), 8)
    if tm is None:
        tm = min(tm_budget, rows_per_core)
    tm = max(8, (min(tm, tm_budget) // 8) * 8)

    # Pad rows so the grid tiles evenly (padded rows sliced off afterwards).
    n_pad = _round_up(N, tm)
    if n_pad != N:
        x1 = jnp.pad(x1, ((0, n_pad - N), (0, 0)))
        x2 = jnp.pad(x2, ((0, n_pad - N), (0, 0)))

    # Weight reshapes / casts hoisted to the wrapper (done once, not per grid step).
    wb_big = jnp.transpose(w_bilinear, (1, 0, 2)).reshape(D, OD).astype(dt)       # (D, O*D)
    red = (jnp.arange(OD)[:, None] // D
           == jnp.arange(O_pad)[None, :]).astype(jnp.float32)                     # (O*D, O_pad)
    wl1 = jnp.zeros((D, O_pad), dt).at[:, :O].set(
        jnp.transpose(w_linear[:, :D]).astype(dt))                                # (D, O_pad)
    wl2 = jnp.zeros((D, O_pad), dt).at[:, :O].set(
        jnp.transpose(w_linear[:, D:]).astype(dt))                                # (D, O_pad)
    b2 = jnp.zeros((1, O_pad), jnp.float32).at[:, :O].set(
        b_linear.astype(jnp.float32))                                             # (1, O_pad)

    # Always set an explicit VMEM limit, clamped to physical capacity minus headroom.
    vmem_est = weight_bytes + tm * per_row + (4 << 20)
    vmem_limit = int(min(max(vmem_est, 16 << 20), vmem_cap - headroom))

    resident = dict(pipeline_mode=pl.Buffered(1))   # constant-index blocks: no double-buffer

    out = pl.pallas_call(
        functools.partial(_biaffine_kernel, O),
        out_shape=jax.ShapeDtypeStruct((n_pad, O_pad), dt),
        grid_spec=pltpu.PrefetchScalarGridSpec(
            num_scalar_prefetch=0,
            grid=(n_pad // tm,),
            in_specs=[
                pl.BlockSpec((tm, D), lambda i: (i, 0)),                  # x1 tile
                pl.BlockSpec((tm, D), lambda i: (i, 0)),                  # x2 tile
                pl.BlockSpec((D, OD), lambda i: (0, 0), **resident),      # bilinear weight
                pl.BlockSpec((OD, O_pad), lambda i: (0, 0), **resident),  # block-reduce matrix
                pl.BlockSpec((D, O_pad), lambda i: (0, 0), **resident),   # linear weight, x1 half
                pl.BlockSpec((D, O_pad), lambda i: (0, 0), **resident),   # linear weight, x2 half
                pl.BlockSpec((1, O_pad), lambda i: (0, 0), **resident),   # bias
            ],
            out_specs=pl.BlockSpec((tm, O_pad), lambda i: (i, 0)),
        ),
        compiler_params=pltpu.CompilerParams(
            dimension_semantics=("parallel",),
            vmem_limit_bytes=vmem_limit,
        ),
    )(x1, x2, wb_big, red, wl1, wl2, b2)

    return out[:N, :O]


def reference(x1, x2, w_bilinear, w_linear, b_linear):
    bil = jnp.einsum('ni,oij,nj->no', x1, w_bilinear, x2)
    lin = jnp.concatenate([x1, x2], axis=-1) @ w_linear.T + b_linear
    return bil + lin


if __name__ == "__main__":
    key = jax.random.PRNGKey(0)
    N, D, O = 32, 32, 4   # batch, in_features, out_features

    k1, k2, k3, k4, k5 = jax.random.split(key, 5)
    x1 = jax.random.normal(k1, (N, D), dtype=jnp.float32)
    x2 = jax.random.normal(k2, (N, D), dtype=jnp.float32)

    # Deterministic parameter init (shapes match torch.nn.Bilinear / Linear).
    bound_bil = 1.0 / jnp.sqrt(D)
    bound_lin = 1.0 / jnp.sqrt(2 * D)
    w_bilinear = jax.random.uniform(k3, (O, D, D), jnp.float32, -bound_bil, bound_bil)
    w_linear = jax.random.uniform(k4, (O, 2 * D), jnp.float32, -bound_lin, bound_lin)
    b_linear = jax.random.uniform(k5, (O,), jnp.float32, -bound_lin, bound_lin)

    out = biaffine_attention(x1, x2, w_bilinear, w_linear, b_linear)
    out = jax.block_until_ready(out)

    ref = reference(x1, x2, w_bilinear, w_linear, b_linear)
    assert out.shape == (N, O)
    assert jnp.allclose(out, ref, atol=1e-4, rtol=1e-4)
    print("KERNEL_OK")
</pallas_src>

<mosaic_0001>
module attributes {stable_mosaic.version = 11 : i64} {
  func.func @_biaffine_kernel(%arg0: i32, %arg1: memref<32x32xf32, #tpu.memory_space<vmem>>, %arg2: memref<32x32xf32, #tpu.memory_space<vmem>>, %arg3: memref<32x128xf32, #tpu.memory_space<vmem>>, %arg4: memref<128x128xf32, #tpu.memory_space<vmem>>, %arg5: memref<32x128xf32, #tpu.memory_space<vmem>>, %arg6: memref<32x128xf32, #tpu.memory_space<vmem>>, %arg7: memref<1x128xf32, #tpu.memory_space<vmem>>, %arg8: memref<32x128xf32, #tpu.memory_space<vmem>>) attributes {dimension_semantics = [#tpu.dimension_semantics<parallel>], iteration_bounds = array<i64: 1>, scalar_prefetch = 0 : i64, scratch_operands = 0 : i64, tpu.core_type = #tpu.core_type<tc>, window_params = [{transform_indices = @transform_0, window_bounds = array<i64: 32, 32>}, {transform_indices = @transform_1, window_bounds = array<i64: 32, 32>}, {pipeline_mode = #tpu.pipeline_mode<synchronous>, transform_indices = @transform_2, window_bounds = array<i64: 32, 128>}, {pipeline_mode = #tpu.pipeline_mode<synchronous>, transform_indices = @transform_3, window_bounds = array<i64: 128, 128>}, {pipeline_mode = #tpu.pipeline_mode<synchronous>, transform_indices = @transform_4, window_bounds = array<i64: 32, 128>}, {pipeline_mode = #tpu.pipeline_mode<synchronous>, transform_indices = @transform_5, window_bounds = array<i64: 32, 128>}, {pipeline_mode = #tpu.pipeline_mode<synchronous>, transform_indices = @transform_6, window_bounds = array<i64: 1, 128>}, {transform_indices = @transform_7, window_bounds = array<i64: 32, 128>}]} {
    %c0 = arith.constant 0 : index
    %c0_0 = arith.constant 0 : index
    %0 = vector.load %arg1[%c0, %c0_0] : memref<32x32xf32, #tpu.memory_space<vmem>>, vector<32x32xf32>
    %c0_1 = arith.constant 0 : index
    %c0_2 = arith.constant 0 : index
    %1 = vector.load %arg2[%c0_1, %c0_2] : memref<32x32xf32, #tpu.memory_space<vmem>>, vector<32x32xf32>
    %c0_3 = arith.constant 0 : index
    %c0_4 = arith.constant 0 : index
    %2 = vector.load %arg3[%c0_3, %c0_4] : memref<32x128xf32, #tpu.memory_space<vmem>>, vector<32x128xf32>
    %cst = arith.constant dense<0.000000e+00> : vector<32x128xf32>
    %3 = tpu.matmul %0, %2, %cst {dimension_numbers = #tpu.dot_dimension_numbers<[1], [0], [0], [1], [0, 0, 1, 1], [], []>} : vector<32x32xf32>, vector<32x128xf32>, vector<32x128xf32> -> vector<32x128xf32>
    %4 = tpu.concatenate %1, %1, %1, %1 in 1 : vector<32x32xf32>, vector<32x32xf32>, vector<32x32xf32>, vector<32x32xf32> -> vector<32x128xf32>
    %5 = arith.mulf %3, %4 : vector<32x128xf32>
    %c0_5 = arith.constant 0 : index
    %c0_6 = arith.constant 0 : index
    %6 = vector.load %arg4[%c0_5, %c0_6] : memref<128x128xf32, #tpu.memory_space<vmem>>, vector<128x128xf32>
    %cst_7 = arith.constant dense<0.000000e+00> : vector<32x128xf32>
    %7 = tpu.matmul %5, %6, %cst_7 {dimension_numbers = #tpu.dot_dimension_numbers<[1], [0], [0], [1], [0, 0, 1, 1], [], []>} : vector<32x128xf32>, vector<128x128xf32>, vector<32x128xf32> -> vector<32x128xf32>
    %c0_8 = arith.constant 0 : index
    %c0_9 = arith.constant 0 : index
    %8 = vector.load %arg5[%c0_8, %c0_9] : memref<32x128xf32, #tpu.memory_space<vmem>>, vector<32x128xf32>
    %cst_10 = arith.constant dense<0.000000e+00> : vector<32x128xf32>
    %9 = tpu.matmul %0, %8, %cst_10 {dimension_numbers = #tpu.dot_dimension_numbers<[1], [0], [0], [1], [0, 0, 1, 1], [], []>} : vector<32x32xf32>, vector<32x128xf32>, vector<32x128xf32> -> vector<32x128xf32>
    %c0_11 = arith.constant 0 : index
    %c0_12 = arith.constant 0 : index
    %10 = vector.load %arg6[%c0_11, %c0_12] : memref<32x128xf32, #tpu.memory_space<vmem>>, vector<32x128xf32>
    %cst_13 = arith.constant dense<0.000000e+00> : vector<32x128xf32>
    %11 = tpu.matmul %1, %10, %cst_13 {dimension_numbers = #tpu.dot_dimension_numbers<[1], [0], [0], [1], [0, 0, 1, 1], [], []>} : vector<32x32xf32>, vector<32x128xf32>, vector<32x128xf32> -> vector<32x128xf32>
    %12 = arith.addf %9, %11 : vector<32x128xf32>
    %c0_14 = arith.constant 0 : index
    %c0_15 = arith.constant 0 : index
    %13 = vector.load %arg7[%c0_14, %c0_15] : memref<1x128xf32, #tpu.memory_space<vmem>>, vector<1x128xf32>
    %14 = vector.broadcast %13 : vector<1x128xf32> to vector<32x128xf32>
    %15 = arith.addf %12, %14 : vector<32x128xf32>
    %16 = arith.addf %7, %15 : vector<32x128xf32>
    %c0_16 = arith.constant 0 : index
    %c0_17 = arith.constant 0 : index
    %17 = vector.load %arg8[%c0_16, %c0_17] : memref<32x128xf32, #tpu.memory_space<vmem>>, vector<32x128xf32>
    tpu.vector_store %arg8[%c0_16, %c0_17], %16 {strides = array<i32>} : memref<32x128xf32, #tpu.memory_space<vmem>>, vector<32x128xf32>,
    return
  }
  func.func @transform_0(%arg0: i32) -> (i32, i32) {
    %c0_i32 = arith.constant 0 : i32
    %c0_i32_0 = arith.constant 0 : i32
    return %arg0, %c0_i32 : i32, i32
  }
  func.func @transform_1(%arg0: i32) -> (i32, i32) {
    %c0_i32 = arith.constant 0 : i32
    %c0_i32_0 = arith.constant 0 : i32
    return %arg0, %c0_i32 : i32, i32
  }
  func.func @transform_2(%arg0: i32) -> (i32, i32) {
    %c0_i32 = arith.constant 0 : i32
    %c0_i32_0 = arith.constant 0 : i32
    %c0_i32_1 = arith.constant 0 : i32
    return %c0_i32, %c0_i32_0 : i32, i32
  }
  func.func @transform_3(%arg0: i32) -> (i32, i32) {
    %c0_i32 = arith.constant 0 : i32
    %c0_i32_0 = arith.constant 0 : i32
    %c0_i32_1 = arith.constant 0 : i32
    return %c0_i32, %c0_i32_0 : i32, i32
  }
  func.func @transform_4(%arg0: i32) -> (i32, i32) {
    %c0_i32 = arith.constant 0 : i32
    %c0_i32_0 = arith.constant 0 : i32
    %c0_i32_1 = arith.constant 0 : i32
    return %c0_i32, %c0_i32_0 : i32, i32
  }
  func.func @transform_5(%arg0: i32) -> (i32, i32) {
    %c0_i32 = arith.constant 0 : i32
    %c0_i32_0 = arith.constant 0 : i32
    %c0_i32_1 = arith.constant 0 : i32
    return %c0_i32, %c0_i32_0 : i32, i32
  }
  func.func @transform_6(%arg0: i32) -> (i32, i32) {
    %c0_i32 = arith.constant 0 : i32
    %c0_i32_0 = arith.constant 0 : i32
    %c0_i32_1 = arith.constant 0 : i32
    return %c0_i32, %c0_i32_0 : i32, i32
  }
  func.func @transform_7(%arg0: i32) -> (i32, i32) {
    %c0_i32 = arith.constant 0 : i32
    %c0_i32_0 = arith.constant 0 : i32
    return %arg0, %c0_i32 : i32, i32
  }
}

</mosaic_0001>

<bundles_post_ra>
// kernel: tpu_custom_call.1
= control target key start
LH: loop header
LB: loop body
LE: loop exit
PB: predicated region body
PF: predicated region fallthrough
CT: control target
= control target key end

     0   :  { %12 = vsyncpa [#allocation3], 0  ;;  %s1229_s0 = inlined_call_operand.hbm [shape: f32[32,32], index: 0, kind: input, shape index: {}]   ;;  %s1230_s1 = inlined_call_operand.hbm [shape: f32[32,32], index: 1, kind: input, shape index: {}]   ;;  %s1231_s2 = inlined_call_operand.hbm [shape: f32[32,128], index: 2, kind: input, shape index: {}]   ;;  %s1232_s3 = inlined_call_operand.hbm [shape: f32[128,128], index: 3, kind: input, shape index: {}]   ;;  %s1233_s4 = inlined_call_operand.hbm [shape: f32[32,128], index: 4, kind: input, shape index: {}]   ;;  %s1234_s5 = inlined_call_operand.hbm [shape: f32[32,128], index: 5, kind: input, shape index: {}]   ;;  %s1235_s6 = inlined_call_operand.vmem [shape: f32[1,128], index: 6, kind: input, shape index: {}]   ;;  %s1236_s7 = inlined_call_operand.hbm [shape: f32[32,128], index: 7, kind: output, shape index: {}]  }
   0x1   :  { %13 = vsyncpa [#allocation6], 0 }
   0x2   :  { %14 = vsyncpa [#allocation9], 0 }
   0x3   :  { %15 = vsyncpa [#allocation12], 0 }
   0x4   :  { %16 = vsyncpa [#allocation4], 0  ;;  %s980_s24 = smov [#allocation5]   ;;  %s981_s26 = smov [#allocation8]  }
   0x5   :  { %s34_s25 = sshll.u32 %s980_s24, 4  ;;  %s58_s27 = sshll.u32 %s981_s26, 4  ;;  %s35_s25 = int_to_ptr.vmem [resolvable:$true] %s34_s25  ;;  %s1032_s27 = int_to_ptr.vmem [resolvable:$true] %s58_s27 }
   0x6   :  { %s816_s30 = scalar_lea.hbm %s1230_s1, 512 }
   0x7   :  { %p817_p0 = scmp.ne.s32.totalorder %s1230_s1, %s816_s30  ;;  %p820_p1 = scmp.lt.u32.totalorder %s816_s30, %s1230_s1 }
   0x9   :  { %p822_p2 = pnand %p820_p1, %p817_p0 }
   0xb   :  { %825 = shalt.err (!%p822_p2)
}
   0xc   :  { %s826_s12 = scalar_lea.vmem %s35_s25, 512  ;;  %p831_p4 = scmp.lt.s32.totalorder %s35_s25, %s35_s25 }
   0xd   :  { %p827_p3 = scmp.ne.s32.totalorder %s35_s25, %s826_s12  ;;  %p832_p5 = scmp.lt.s32.totalorder %s826_s12, %s826_s12 }
   0xf   :  { %p833_p6 = por %p832_p5, %p831_p4 }
  0x11   :  { %p834_p7 = pnand %p833_p6, %p827_p3 }
  0x13   :  { %837 = shalt.err (!%p834_p7)
}
  0x14   :  { %s982_s13 = smov 128   ;;  %s983_s14 = smov 8  }
  0x15   :  { %40 = dma.hbm_to_vmem [thread:$0]  %s1230_s1, 512, %s35_s25, [#allocation6], %s982_s13, %s982_s13, %s983_s14  }
  0x16   :  { %s838_s19 = scalar_lea.hbm %s1232_s3, 2048 }
  0x17   :  { %p839_p8 = scmp.ne.s32.totalorder %s1232_s3, %s838_s19  ;;  %p842_p9 = scmp.lt.u32.totalorder %s838_s19, %s1232_s3 }
  0x19   :  { %p844_p10 = pnand %p842_p9, %p839_p8 }
  0x1b   :  { %847 = shalt.err (!%p844_p10)
}
  0x1c   :  { %s848_s24 = scalar_lea.vmem %s1032_s27, 2048  ;;  %p853_p12 = scmp.lt.s32.totalorder %s1032_s27, %s1032_s27 }
  0x1d   :  { %p849_p11 = scmp.ne.s32.totalorder %s1032_s27, %s848_s24  ;;  %p854_p13 = scmp.lt.s32.totalorder %s848_s24, %s848_s24 }
  0x1f   :  { %p855_p0 = por %p854_p13, %p853_p12 }
  0x21   :  { %p856_p1 = pnand %p855_p0, %p849_p11 }
  0x23   :  { %859 = shalt.err (!%p856_p1)
}
  0x24   :  { %64 = dma.hbm_to_vmem [thread:$0]  %s1232_s3, 2048, %s1032_s27, [#allocation9], %s982_s13, %s982_s13, %s983_s14  }
  0x25   :  { %s984_s26 = smov [#allocation2]   ;;  %s985_s29 = smov [#allocation7]  }
  0x26   :  { %s22_s28 = sshll.u32 %s984_s26, 4  ;;  %s46_s30 = sshll.u32 %s985_s29, 4  ;;  %s23_s28 = int_to_ptr.vmem [resolvable:$true] %s22_s28  ;;  %s1069_s30 = int_to_ptr.vmem [resolvable:$true] %s46_s30 }
  0x27   :  { %s860_s10 = scalar_lea.hbm %s1229_s0, 512 }
  0x28   :  { %p861_p2 = scmp.ne.s32.totalorder %s1229_s0, %s860_s10  ;;  %p864_p3 = scmp.lt.u32.totalorder %s860_s10, %s1229_s0 }
  0x2a   :  { %p866_p4 = pnand %p864_p3, %p861_p2 }
  0x2c   :  { %869 = shalt.err (!%p866_p4)
}
  0x2d   :  { %s870_s3 = scalar_lea.vmem %s23_s28, 512  ;;  %p875_p6 = scmp.lt.s32.totalorder %s23_s28, %s23_s28 }
  0x2e   :  { %p871_p5 = scmp.ne.s32.totalorder %s23_s28, %s870_s3  ;;  %p876_p7 = scmp.lt.s32.totalorder %s870_s3, %s870_s3 }
  0x30   :  { %p877_p8 = por %p876_p7, %p875_p6 }
  0x32   :  { %p878_p9 = pnand %p877_p8, %p871_p5 }
  0x34   :  { %881 = shalt.err (!%p878_p9)
}
  0x35   :  { %28 = dma.hbm_to_vmem [thread:$0]  %s1229_s0, 512, %s23_s28, [#allocation3], %s982_s13, %s982_s13, %s983_s14  }
  0x36   :  { %s882_s20 = scalar_lea.hbm %s1231_s2, 512 }
  0x37   :  { %p883_p10 = scmp.ne.s32.totalorder %s1231_s2, %s882_s20  ;;  %p886_p11 = scmp.lt.u32.totalorder %s882_s20, %s1231_s2 }
  0x39   :  { %p888_p12 = pnand %p886_p11, %p883_p10 }
  0x3b   :  { %891 = shalt.err (!%p888_p12)
}
  0x3c   :  { %s892_s1 = scalar_lea.vmem %s1069_s30, 512  ;;  %p897_p0 = scmp.lt.s32.totalorder %s1069_s30, %s1069_s30 }
  0x3d   :  { %p893_p13 = scmp.ne.s32.totalorder %s1069_s30, %s892_s1  ;;  %p898_p1 = scmp.lt.s32.totalorder %s892_s1, %s892_s1 }
  0x3f   :  { %p899_p2 = por %p898_p1, %p897_p0 }
  0x41   :  { %p900_p3 = pnand %p899_p2, %p893_p13 }
  0x43   :  { %903 = shalt.err (!%p900_p3)
}
  0x44   :  { %52 = dma.hbm_to_vmem [thread:$0]  %s1231_s2, 512, %s1069_s30, [#allocation6], %s982_s13, %s982_s13, %s983_s14  }
  0x45   :  { %s986_s26 = smov [#allocation10]   ;;  %s987_s29 = smov [#allocation11]  }
  0x46   :  { %s70_s28 = sshll.u32 %s986_s26, 4  ;;  %s82_s8 = sshll.u32 %s987_s29, 4  ;;  %s71_s28 = int_to_ptr.vmem [resolvable:$true] %s70_s28  ;;  %s1106_s8 = int_to_ptr.vmem [resolvable:$true] %s82_s8 }
  0x47   :  { %s904_s11 = scalar_lea.hbm %s1233_s4, 512 }
  0x48   :  { %p905_p4 = scmp.ne.s32.totalorder %s1233_s4, %s904_s11  ;;  %p908_p5 = scmp.lt.u32.totalorder %s904_s11, %s1233_s4 }
  0x4a   :  { %p910_p6 = pnand %p908_p5, %p905_p4 }
  0x4c   :  { %913 = shalt.err (!%p910_p6)
}
  0x4d   :  { %s914_s2 = scalar_lea.vmem %s71_s28, 512  ;;  %p919_p8 = scmp.lt.s32.totalorder %s71_s28, %s71_s28 }
  0x4e   :  { %p915_p7 = scmp.ne.s32.totalorder %s71_s28, %s914_s2  ;;  %p920_p9 = scmp.lt.s32.totalorder %s914_s2, %s914_s2 }
  0x50   :  { %p921_p10 = por %p920_p9, %p919_p8 }
  0x52   :  { %p922_p11 = pnand %p921_p10, %p915_p7 }
  0x54   :  { %925 = shalt.err (!%p922_p11)
}
  0x55   :  { %76 = dma.hbm_to_vmem [thread:$0]  %s1233_s4, 512, %s71_s28, [#allocation9], %s982_s13, %s982_s13, %s983_s14  }
  0x56   :  { %s926_s19 = scalar_lea.hbm %s1234_s5, 512 }
  0x57   :  { %p927_p12 = scmp.ne.s32.totalorder %s1234_s5, %s926_s19  ;;  %p930_p13 = scmp.lt.u32.totalorder %s926_s19, %s1234_s5 }
  0x59   :  { %p932_p0 = pnand %p930_p13, %p927_p12 }
  0x5b   :  { %935 = shalt.err (!%p932_p0)
}
  0x5c   :  { %s936_s24 = scalar_lea.vmem %s1106_s8, 512  ;;  %p941_p2 = scmp.lt.s32.totalorder %s1106_s8, %s1106_s8 }
  0x5d   :  { %p937_p1 = scmp.ne.s32.totalorder %s1106_s8, %s936_s24  ;;  %p942_p3 = scmp.lt.s32.totalorder %s936_s24, %s936_s24 }
  0x5f   :  { %p943_p4 = por %p942_p3, %p941_p2 }
  0x61   :  { %p944_p5 = pnand %p943_p4, %p937_p1 }
  0x63   :  { %947 = shalt.err (!%p944_p5)
}
  0x64   :  { %88 = dma.hbm_to_vmem [thread:$0]  %s1234_s5, 512, %s1106_s8, [#allocation12], %s982_s13, %s982_s13, %s983_s14  }
  0x65   :  { %970 = dma.done.wait [#allocation3], 512  }
  0x66   :  { %971 = vsyncadd [#allocation3], 4294966784 }
  0x67   :  { %972 = dma.done.wait [#allocation6], 1024  }
  0x68   :  { %973 = vsyncadd [#allocation6], 4294966272 }
  0x69   :  { %974 = dma.done.wait [#allocation9], 2560  }
  0x6a   :  { %975 = vsyncadd [#allocation9], 4294964736 }
  0x6b   :  { %976 = dma.done.wait [#allocation12], 512  }
  0x6c   :  { %977 = vsyncadd [#allocation12], 4294966784  ;;  %vm121_vm0 = vcmask 261120   ;;  %v117_v0 = vld [vmem:[#allocation7] sm:$0xff]  ;;  %v118_v1 = vld [vmem:[#allocation7 + $0x8] sm:$0xff]  ;;  %s988_s5 = smov 32  }
  0x6d   :  { %v119_v2 = vld [vmem:[#allocation7 + $0x10] sm:$0xff]  ;;  %v736_v3 = vpack.c.bf16 %v118_v1, %v117_v0  ;;  %v120_v4 = vld [vmem:[#allocation7 + $0x18] sm:$0xff]  ;;  %v1143_v5 = vld [vmem:[#allocation2] sm:$0xff]  ;;  %s989_s0 = smov 64   ;;  %s990_s25 = smov 96   ;;  %vm263_vm1 = vcmask 523264  }
  0x6e   :  { %v740_v6 = vpack.c.bf16 %v120_v4, %v119_v2  ;;  %664 = vmatprep.mubr.msk.f32.mxu0 %vm121_vm0, %v1143_v5  ;;  %v1147_v7 = vld [vmem:[#allocation5] sm:$0xff]  ;;  %v1151_v8 = vld [vmem:[#allocation5 + $0x8] sm:$0xff]  ;;  %v279_v11 = vld [vmem:[#allocation8 + $0x10] sm:$0xff]  ;;  %vm268_vm2 = vcmask 785408   ;;  %s991_s29 = smov [#allocation13]  }
  0x6f   :  { %737 = vmatprep.subr.bf16.mxu0 %v736_v3  ;;  %223 = vrot.lane.b32.xlu0 %v1147_v7, %s988_s5  ;;  %v277_v9 = vld [vmem:[#allocation8] sm:$0xff]  ;;  %v278_v10 = vld [vmem:[#allocation8 + $0x8] sm:$0xff]  ;;  %v280_v13 = vld [vmem:[#allocation8 + $0x18] sm:$0xff]  ;;  %s584_s8 = sshll.u32 %s991_s29, 4  ;;  %s585_s8 = int_to_ptr.vmem [resolvable:$true] %s584_s8 }
  0x70   :  { %739 = vmatpush3.bf16.msra.mxu0 %v736_v3  ;;  %235 = vrot.lane.b32.xlu1 %v1147_v7, %s989_s0  ;;  %v760_v12 = vpack.c.bf16 %v278_v10, %v277_v9  ;;  %v297_v14 = vld [vmem:[#allocation11] sm:$0xff]  ;;  %v298_v15 = vld [vmem:[#allocation11 + $0x8] sm:$0xff]  ;;  %v764_v16 = vpack.c.bf16 %v280_v13, %v279_v11  ;;  %v299_v20 = vld [vmem:[#allocation11 + $0x10] sm:$0xff]  ;;  %p953_p7 = scmp.lt.s32.totalorder %s585_s8, %s585_s8 }
  0x71   :  { %741 = vmatprep.subr.bf16.mxu0 %v740_v6  ;;  %v744_v17 = vpack.c.bf16 %v298_v15, %v297_v14  ;;  %v281_v18 = vld [vmem:[#allocation8 + $0x20] sm:$0xff]  ;;  %v282_v19 = vld [vmem:[#allocation8 + $0x28] sm:$0xff]  ;;  %v300_v21 = vld [vmem:[#allocation11 + $0x18] sm:$0xff] }
  0x72   :  { %761 = vmatprep.subr.bf16.mxu1 %v760_v12  ;;  %v110_v22 = vld [vmem:[#allocation2 + $0x8] sm:$0xff]  ;;  %v111_v23 = vld [vmem:[#allocation2 + $0x10] sm:$0xff]  ;;  %v768_v24 = vpack.c.bf16 %v282_v19, %v281_v18  ;;  %v748_v25 = vpack.c.bf16 %v300_v21, %v299_v20  ;;  %v284_v27 = vld [vmem:[#allocation8 + $0x38] sm:$0xff] }
  0x73   :  { %225 = vrot.lane.b32.xlu0 %v1151_v8, %s988_s5  ;;  %763 = vmatpush3.bf16.msra.mxu1 %v760_v12  ;;  %v283_v26 = vld [vmem:[#allocation8 + $0x30] sm:$0xff]  ;;  %v293_v28 = vld [vmem:[#allocation10] sm:$0xff]  ;;  %v294_v29 = vld [vmem:[#allocation10 + $0x8] sm:$0xff] }
  0x74   :  { %743 = vmatpush3.bf16.msra.mxu0 %v740_v6  ;;  %237 = vrot.lane.b32.xlu1 %v1151_v8, %s989_s0  ;;  %v112_v30 = vld [vmem:[#allocation2 + $0x18] sm:$0xff]  ;;  %v1165_v31 = vld [vmem:[#allocation5 + $0x10] sm:$0xff]  ;;  %v772_v33 = vpack.c.bf16 %v284_v27, %v283_v26  ;;  %v752_v34 = vpack.c.bf16 %v294_v29, %v293_v28  ;;  %v285_v35 = vld [vmem:[#allocation8 + $0x40] sm:$0xff] }
  0x75   :  { %745 = vmatprep.subr.bf16.mxu0 %v744_v17  ;;  %765 = vmatprep.subr.bf16.mxu1 %v764_v16  ;;  %v1167_v32 = vld [vmem:[#allocation5 + $0x18] sm:$0xff]  ;;  %v286_v36 = vld [vmem:[#allocation8 + $0x48] sm:$0xff]  ;;  %v295_v37 = vld [vmem:[#allocation10 + $0x10] sm:$0xff] }
  0x76   :  { %v296_v38 = vld [vmem:[#allocation10 + $0x18] sm:$0xff]  ;;  %v776_v39 = vpack.c.bf16 %v286_v36, %v285_v35  ;;  %v287_v41 = vld [vmem:[#allocation8 + $0x50] sm:$0xff]  ;;  %v289_v44 = vld [vmem:[#allocation8 + $0x60] sm:$0xff] }
  0x77   :  { %665 = vmatmul.mubr.msk.f32.vlgmr.msra.gmra.mrb[0].mxu0 %vm121_vm0, %v110_v22  ;;  %247 = vrot.lane.b32.xlu0 %v1147_v7, %s990_s25  ;;  %v756_v40 = vpack.c.bf16 %v296_v38, %v295_v37  ;;  %v288_v42 = vld [vmem:[#allocation8 + $0x58] sm:$0xff]  ;;  %v290_v45 = vld [vmem:[#allocation8 + $0x68] sm:$0xff]  ;;  %v291_v47 = vld [vmem:[#allocation8 + $0x70] sm:$0xff] }
  0x78   :  { %667 = vmatprep.mubr.msk.f32.mxu0 %vm121_vm0, %v111_v23  ;;  %249 = vrot.lane.b32.xlu1 %v1151_v8, %s990_s25  ;;  %v780_v43 = vpack.c.bf16 %v288_v42, %v287_v41  ;;  %v784_v46 = vpack.c.bf16 %v290_v45, %v289_v44  ;;  %v292_v48 = vld [vmem:[#allocation8 + $0x78] sm:$0xff] }
  0x79   :  { %767 = vmatpush3.bf16.msra.mxu1 %v764_v16  ;;  %747 = vmatpush3.bf16.msra.mxu0 %v744_v17  ;;  %v788_v49 = vpack.c.bf16 %v292_v48, %v291_v47 }
  0x7a   :  { %769 = vmatprep.subr.bf16.mxu1 %v768_v24  ;;  %749 = vmatprep.subr.bf16.mxu0 %v748_v25 }
  0x7b   :  { %668 = vmatmul.mubr.msk.f32.gmra.mrb[2].mxu0 %vm121_vm0, %v112_v30  ;;  %227 = vrot.lane.b32.xlu0 %v1165_v31, %s988_s5 }
  0x7c   :  { %229 = vrot.lane.b32.xlu1 %v1167_v32, %s988_s5  ;;  %678 = vmatprep.mubr.msk.f32.mxu0 %vm121_vm0, %v1147_v7 }
  0x7d   :  { %771 = vmatpush3.bf16.msra.mxu1 %v768_v24  ;;  %751 = vmatpush3.bf16.msra.mxu0 %v748_v25 }
  0x7e   :  { %773 = vmatprep.subr.bf16.mxu1 %v772_v33  ;;  %753 = vmatprep.subr.bf16.mxu0 %v752_v34 }
  0x7f   :  { %239 = vrot.lane.b32.xlu0 %v1165_v31, %s989_s0 }
  0x80   :  { %241 = vrot.lane.b32.xlu1 %v1167_v32, %s989_s0  ;;  %679 = vmatmul.mubr.msk.f32.vlgmr.msra.gmra.mrb[4].mxu0 %vm121_vm0, %v1151_v8 }
  0x81   :  { %775 = vmatpush3.bf16.msra.mxu1 %v772_v33  ;;  %755 = vmatpush3.bf16.msra.mxu0 %v752_v34 }
  0x82   :  { %681 = vmatprep.mubr.msk.f32.mxu0 %vm121_vm0, %v1165_v31  ;;  %777 = vmatprep.subr.bf16.mxu1 %v776_v39 }
  0x83   :  { %251 = vrot.lane.b32.xlu0 %v1165_v31, %s990_s25  ;;  %757 = vmatprep.subr.bf16.mxu0 %v756_v40 }
  0x84   :  { %253 = vrot.lane.b32.xlu1 %v1167_v32, %s990_s25  ;;  %682 = vmatmul.mubr.msk.f32.gmra.mrb[6].mxu0 %vm121_vm0, %v1167_v32 }
  0x85   :  { %779 = vmatpush3.bf16.msra.mxu1 %v776_v39  ;;  %759 = vmatpush3.bf16.msra.mxu0 %v756_v40 }
  0x86   :  { %692 = vmatprep.mubr.msk.f32.mxu0 %vm121_vm0, %v1143_v5  ;;  %781 = vmatprep.subr.bf16.mxu1 %v780_v43 }
  0x88   :  { %693 = vmatmul.mubr.msk.f32.vlgmr.msra.gmra.mrb[4].mxu0 %vm121_vm0, %v110_v22  ;;  %v611_v22 = vld [vmem:[%s1235_s6] ss:$0 sm:$0xff]  ;;  %s948_s6 = scalar_lea.vmem %s585_s8, 512 }
  0x89   :  { %783 = vmatpush3.bf16.msra.mxu1 %v780_v43  ;;  %695 = vmatprep.mubr.msk.f32.mxu0 %vm121_vm0, %v111_v23  ;;  %p949_p6 = scmp.ne.s32.totalorder %s585_s8, %s948_s6  ;;  %p954_p8 = scmp.lt.s32.totalorder %s948_s6, %s948_s6 }
  0x8a   :  { %785 = vmatprep.subr.bf16.mxu1 %v784_v46 }
  0x8b   :  { %p955_p9 = por %p954_p8, %p953_p7 }
  0x8c   :  { %696 = vmatmul.mubr.msk.f32.gmra.mrb[6].mxu0 %vm121_vm0, %v112_v30 }
  0x8d   :  { %787 = vmatpush3.bf16.msra.mxu1 %v784_v46  ;;  %p956_p10 = pnand %p955_p9, %p949_p6 }
  0x8e   :  { %789 = vmatprep.subr.bf16.mxu1 %v788_v49 }
  0x91   :  { %791 = vmatpush3.bf16.msra.mxu1 %v788_v49 }
  0xe1   :  { %v224_v50 = vpop.permute.xlu0 %223 }
  0xe2   :  { %v236_v51 = vpop.permute.xlu1 %235  ;;  %v259_v58 = vsel %vm121_vm0, %v1147_v7, %v224_v50 }
  0xe3   :  { %v264_v62 = vsel %vm263_vm1, %v259_v58, %v236_v51 }
  0xe5   :  { %v226_v52 = vpop.permute.xlu0 %225 }
  0xe6   :  { %v238_v53 = vpop.permute.xlu1 %237  ;;  %v260_v59 = vsel %vm121_vm0, %v1151_v8, %v226_v52 }
  0xe7   :  { %v265_v63 = vsel %vm263_vm1, %v260_v59, %v238_v53 }
  0xe9   :  { %v248_v54 = vpop.permute.xlu0 %247 }
  0xea   :  { %v250_v55 = vpop.permute.xlu1 %249  ;;  %v269_v4 = vsel %vm268_vm2, %v264_v62, %v248_v54 }
  0xeb   :  { %v270_v7 = vsel %vm268_vm2, %v265_v63, %v250_v55 }
  0xed   :  { %v228_v56 = vpop.permute.xlu0 %227 }
  0xee   :  { %v230_v57 = vpop.permute.xlu1 %229  ;;  %v261_v0 = vsel %vm121_vm0, %v1165_v31, %v228_v56 }
  0xef   :  { %v262_v1 = vsel %vm121_vm0, %v1167_v32, %v230_v57 }
  0xf1   :  { %v240_v60 = vpop.permute.xlu0 %239 }
  0xf2   :  { %v242_v61 = vpop.permute.xlu1 %241  ;;  %v266_v5 = vsel %vm263_vm1, %v261_v0, %v240_v60 }
  0xf3   :  { %v267_v9 = vsel %vm263_vm1, %v262_v1, %v242_v61 }
  0xf5   :  { %v252_v6 = vpop.permute.xlu0 %251 }
  0xf6   :  { %v254_v10 = vpop.permute.xlu1 %253  ;;  %v271_v14 = vsel %vm268_vm2, %v266_v5, %v252_v6 }
  0xf7   :  { %v272_v15 = vsel %vm268_vm2, %v267_v9, %v254_v10 }
 0x14a   :  { %v666_v2 = vpop.f32.mrb[0].mxu0 }
 0x14b   :  { %v200_v3 = vpop.f32.mrb[1].mxu0  ;;  %v274_v11 = vmul.f32 %v666_v2, %v270_v7 }
 0x14c   :  { %v273_v8 = vmul.f32 %v269_v4, %v200_v3 }
 0x14e   :  { %v669_v12 = vpop.f32.mrb[2].mxu0  ;;  %730 = vmatprep.mubr.f32.mxu1 %v273_v8 }
 0x14f   :  { %v210_v13 = vpop.f32.mrb[3].mxu0  ;;  %731 = vmatmul.mubr.f32.vlgmr.msra.gmra.mrb[0].mxu1 %v274_v11  ;;  %v276_v17 = vmul.f32 %v669_v12, %v272_v15 }
 0x150   :  { %v275_v16 = vmul.f32 %v271_v14, %v210_v13 }
 0x152   :  { %733 = vmatprep.mubr.f32.mxu1 %v275_v16 }
 0x153   :  { %734 = vmatmul.mubr.f32.gmra.mrb[2].mxu1 %v276_v17 }
 0x15b   :  { %v694_v18 = vpop.f32.mrb[4].mxu0 }
 0x15c   :  { %v460_v19 = vpop.f32.mrb[5].mxu0  ;;  %v792_v23 = vadd.f32 %v694_v18, %v611_v22 }
 0x15d   :  { %v794_v24 = vadd.f32 %v611_v22, %v460_v19 }
 0x15f   :  { %v697_v20 = vpop.f32.mrb[6].mxu0 }
 0x160   :  { %v470_v21 = vpop.f32.mrb[7].mxu0  ;;  %v796_v29 = vadd.f32 %v697_v20, %v611_v22 }
 0x161   :  { %v798_v30 = vadd.f32 %v611_v22, %v470_v21 }
 0x222   :  { %v732_v25 = vpop.f32.mrb[0].mxu1 }
 0x223   :  { %v793_v26 = vadd.f32 %v792_v23, %v732_v25  ;;  %v556_v27 = vpop.f32.mrb[1].mxu1 }
 0x224   :  { %v795_v28 = vadd.f32 %v794_v24, %v556_v27 }
 0x225   :  { %576 = vst [vmem:[#allocation13 + $0x8] sm:$0xff] %v793_v26 }
 0x226   :  { %575 = vst [vmem:[#allocation13] sm:$0xff] %v795_v28  ;;  %v735_v31 = vpop.f32.mrb[2].mxu1 }
 0x227   :  { %v797_v32 = vadd.f32 %v796_v29, %v735_v31  ;;  %v566_v33 = vpop.f32.mrb[3].mxu1 }
 0x228   :  { %v799_v34 = vadd.f32 %v798_v30, %v566_v33 }
 0x229   :  { %578 = vst [vmem:[#allocation13 + $0x18] sm:$0xff] %v797_v32 }
 0x22a   :  { %577 = vst [vmem:[#allocation13 + $0x10] sm:$0xff] %v799_v34 }
 0x22b   :  { %959 = shalt.err (!%p956_p10)
}
 0x22c   :  { %s960_s11 = scalar_lea.hbm %s1236_s7, 512 }
 0x22d   :  { %p961_p11 = scmp.ne.s32.totalorder %s1236_s7, %s960_s11  ;;  %p964_p12 = scmp.lt.u32.totalorder %s960_s11, %s1236_s7 }
 0x22f   :  { %p966_p13 = pnand %p964_p12, %p961_p11 }
 0x231   :  { %969 = shalt.err (!%p966_p13)
}
 0x232   :  { %590 = dma.vmem_to_hbm [thread:$0]  %s585_s8, 512, %s1236_s7, [#allocation4], %s982_s13, %s982_s13, %s983_s14  }
 0x233   :  { %978 = dma.done.wait [#allocation4], 512  }
 0x234   :  { %979 = vsyncadd [#allocation4], 4294966784 }
 0x235   :  { %594 = vsyncpa [#allocation3], 1 }
 0x236   :  { %595 = vsyncpa [#allocation6], 1 }
 0x237   :  { %596 = vsyncpa [#allocation9], 1 }
 0x238   :  { %597 = vsyncpa [#allocation12], 1 }
 0x239   :  { %598 = vsyncpa [#allocation4], 1 }

</bundles_post_ra>
